<compile_context>
chip_gen: v5e
topology: v5e:2x2
jax: 0.10.0
libtpu: 0.0.40
codegen_flags: <defaults>
</compile_context>

<pallas_src>
import jax
import jax.numpy as jnp
from jax.experimental import pallas as pl
from jax.experimental.pallas import tpu as pltpu


def _decoder_kernel_t(xt_ref, w1_ref, b1_ref, w2_ref, b2_ref, outt_ref):
    """One batch tile, transposed (batch-in-lanes) layout.

    xt   : [latent, TB]      w1 : [hidden, latent]   b1 : [hidden, 1]
    outt : [output, TB]      w2 : [output, hidden]   b2 : [output, 1]
    """
    # h^T = tanh(W1 @ x^T + b1)  -- MXU matmul with f32 accumulation, EUP tanh in f32.
    h = jnp.tanh(
        jnp.dot(w1_ref[...], xt_ref[...], preferred_element_type=jnp.float32)
        + b1_ref[...].astype(jnp.float32)
    )
    # out^T = W2 @ h^T + b2.  Cast h to the weight dtype so a bf16 model uses the
    # native bf16 MXU path; accumulation stays f32.
    out = (
        jnp.dot(w2_ref[...], h.astype(w2_ref.dtype), preferred_element_type=jnp.float32)
        + b2_ref[...].astype(jnp.float32)
    )
    outt_ref[...] = out.astype(outt_ref.dtype)


def _round_up(n, m):
    return ((n + m - 1) // m) * m


def _pick_batch_tile(B, tb):
    """Lane-aligned batch tile; best-effort even tile count for v7x megacore."""
    if B <= tb:
        return B                        # single block, full extent (any size is legal)
    tb = max(128, (tb // 128) * 128)    # lane-aligned tiles
    n = pl.cdiv(B, tb)
    if n > 1 and n % 2 == 1:
        # Try one more tile so the 2 TensorCores on v7x see balanced work.
        alt = _round_up(pl.cdiv(B, n + 1), 128)
        if pl.cdiv(B, alt) % 2 == 0:
            tb = alt
    return tb


def _vmem_estimate_bytes(TB, latent, hidden, output, io_itemsize):
    """Rough VMEM footprint: double-buffered x/out tiles + resident weights
    (double-buffered by default despite the constant index_map) + f32 temps."""
    x_tile = latent * TB * io_itemsize
    o_tile = output * TB * io_itemsize
    weights = (hidden * latent + hidden + output * hidden + output) * io_itemsize
    f32_tmp = (hidden + output) * TB * 4
    return 2 * (x_tile + o_tile + weights) + f32_tmp


def decoder_forward_t(xt, params, *, tb=2048):
    """Lane-dense entry point: xt is [latent_dim, B]; returns out^T [output_dim, B].

    params = (w1, b1, w2, b2) in PyTorch-native layout:
      w1 [hidden, latent], b1 [hidden, 1], w2 [output, hidden], b2 [output, 1].
    """
    w1, b1, w2, b2 = params
    latent_dim, B = xt.shape
    hidden_dim = w1.shape[0]
    output_dim = w2.shape[0]
    out_dtype = xt.dtype
    io_itemsize = jnp.dtype(out_dtype).itemsize

    TB = _pick_batch_tile(B, tb)
    # Stay comfortably under the 32 MiB default scoped VMEM limit (v7x physical
    # VMEM is only 64 MiB) if hidden/output dims are ever scaled up.
    vmem_budget = 24 * (1 << 20)
    while TB > 128 and _vmem_estimate_bytes(
        TB, latent_dim, hidden_dim, output_dim, io_itemsize
    ) > vmem_budget:
        TB = max(128, ((TB // 2) // 128) * 128)

    n_tiles = pl.cdiv(B, TB)

    cost = pl.CostEstimate(
        flops=2 * B * (latent_dim * hidden_dim + hidden_dim * output_dim),
        transcendentals=B * hidden_dim,  # tanh
        bytes_accessed=(
            xt.size * io_itemsize
            + B * output_dim * io_itemsize
            + sum(p.size * jnp.dtype(p.dtype).itemsize for p in params)
        ),
    )

    return pl.pallas_call(
        _decoder_kernel_t,
        out_shape=jax.ShapeDtypeStruct((output_dim, B), out_dtype),
        grid=(n_tiles,),
        in_specs=[
            pl.BlockSpec((latent_dim, TB), lambda i: (0, i)),          # x^T tile
            pl.BlockSpec((hidden_dim, latent_dim), lambda i: (0, 0)),  # W1 (resident)
            pl.BlockSpec((hidden_dim, 1), lambda i: (0, 0)),           # b1 (resident)
            pl.BlockSpec((output_dim, hidden_dim), lambda i: (0, 0)),  # W2 (resident)
            pl.BlockSpec((output_dim, 1), lambda i: (0, 0)),           # b2 (resident)
        ],
        out_specs=pl.BlockSpec((output_dim, TB), lambda i: (0, i)),
        compiler_params=pltpu.CompilerParams(
            # Shard batch tiles across v7x's 2 TensorCores only when there is
            # more than one tile; for a single tile sharding is pure overhead.
            dimension_semantics=("parallel",) if n_tiles > 1 else ("arbitrary",),
        ),
        cost_estimate=cost,
    )(xt, w1, b1, w2, b2)


def decoder_forward(x, params, *, tb=2048):
    """PyTorch-semantics wrapper: x [B, latent_dim] -> out [B, output_dim].

    The transposes are layout plumbing so the kernel sees batch in the lane
    (last) dimension; all kernel-side loads/stores are lane-dense.
    """
    out_t = decoder_forward_t(x.T, params, tb=tb)
    return out_t.T


def init_params(key, latent_dim, hidden_dim, output_dim, dtype=jnp.float32):
    """PyTorch-Linear-style uniform init. Weights PyTorch-native [out, in];
    biases as column vectors [out, 1] for the transposed (batch-in-lanes) kernel."""
    ks = jax.random.split(key, 4)

    def lin(kw, kb, fan_in, fan_out):
        bound = 1.0 / jnp.sqrt(jnp.float32(fan_in))
        w = jax.random.uniform(kw, (fan_out, fan_in), jnp.float32, -bound, bound)
        b = jax.random.uniform(kb, (fan_out, 1), jnp.float32, -bound, bound)
        return w.astype(dtype), b.astype(dtype)

    w1, b1 = lin(ks[0], ks[1], latent_dim, hidden_dim)
    w2, b2 = lin(ks[2], ks[3], hidden_dim, output_dim)
    return (w1, b1, w2, b2)


def _reference(x, params):
    w1, b1, w2, b2 = params
    h = jnp.tanh(x @ w1.T + b1[:, 0])
    return h @ w2.T + b2[:, 0]


if __name__ == "__main__":
    # Small shapes consistent with Decoder.forward: x is [B, latent_dim].
    latent_dim, hidden_dim, output_dim = 16, 32, 24

    key = jax.random.PRNGKey(0)
    kx, kx2, kp = jax.random.split(key, 3)
    params = init_params(kp, latent_dim, hidden_dim, output_dim)

    # 1) Small batch: single-block fast path (no grid, block == full array).
    B_small = 16
    x_small = jax.random.normal(kx, (B_small, latent_dim), jnp.float32)
    out_small = decoder_forward(x_small, params)
    jax.block_until_ready(out_small)
    ref_small = _reference(x_small, params)
    assert out_small.shape == (B_small, output_dim)
    assert jnp.allclose(out_small, ref_small, atol=1e-5, rtol=1e-5)

    # 2) Larger batch with a small tile so the grid path is exercised:
    #    cdiv(1500, 512) = 3 -> rebalanced to 4 tiles of 384 (even tile count
    #    for v7x), with a ragged last block (348 valid batch columns).
    B_big = 1500
    x_big = jax.random.normal(kx2, (B_big, latent_dim), jnp.float32)
    out_big = decoder_forward(x_big, params, tb=512)
    jax.block_until_ready(out_big)
    ref_big = _reference(x_big, params)
    assert out_big.shape == (B_big, output_dim)
    assert jnp.allclose(out_big, ref_big, atol=1e-5, rtol=1e-5)

    # 3) Optional bf16 HBM I/O path (matmul accumulation and tanh stay f32).
    params_bf16 = jax.tree_util.tree_map(lambda p: p.astype(jnp.bfloat16), params)
    out_bf16 = decoder_forward(x_big.astype(jnp.bfloat16), params_bf16, tb=512)
    jax.block_until_ready(out_bf16)
    assert out_bf16.dtype == jnp.bfloat16
    assert jnp.allclose(out_bf16.astype(jnp.float32), ref_big, atol=1e-1, rtol=1e-1)

    print("KERNEL_OK")
</pallas_src>

<mosaic_0001>
module attributes {stable_mosaic.version = 11 : i64} {
  func.func @_decoder_kernel_t(%arg0: i32, %arg1: memref<16x16xf32, #tpu.memory_space<vmem>>, %arg2: memref<32x16xf32, #tpu.memory_space<vmem>>, %arg3: memref<32x1xf32, #tpu.memory_space<vmem>>, %arg4: memref<24x32xf32, #tpu.memory_space<vmem>>, %arg5: memref<24x1xf32, #tpu.memory_space<vmem>>, %arg6: memref<24x16xf32, #tpu.memory_space<vmem>>) attributes {dimension_semantics = [#tpu.dimension_semantics<arbitrary>], iteration_bounds = array<i64: 1>, scalar_prefetch = 0 : i64, scratch_operands = 0 : i64, tpu.core_type = #tpu.core_type<tc>, window_params = [{transform_indices = @transform_0, window_bounds = array<i64: 16, 16>}, {pipeline_mode = #tpu.pipeline_mode<synchronous>, transform_indices = @transform_1, window_bounds = array<i64: 32, 16>}, {pipeline_mode = #tpu.pipeline_mode<synchronous>, transform_indices = @transform_2, window_bounds = array<i64: 32, 1>}, {pipeline_mode = #tpu.pipeline_mode<synchronous>, transform_indices = @transform_3, window_bounds = array<i64: 24, 32>}, {pipeline_mode = #tpu.pipeline_mode<synchronous>, transform_indices = @transform_4, window_bounds = array<i64: 24, 1>}, {transform_indices = @transform_5, window_bounds = array<i64: 24, 16>}]} {
    %c0 = arith.constant 0 : index
    %c0_0 = arith.constant 0 : index
    %0 = vector.load %arg2[%c0, %c0_0] : memref<32x16xf32, #tpu.memory_space<vmem>>, vector<32x16xf32>
    %c0_1 = arith.constant 0 : index
    %c0_2 = arith.constant 0 : index
    %1 = vector.load %arg1[%c0_1, %c0_2] : memref<16x16xf32, #tpu.memory_space<vmem>>, vector<16x16xf32>
    %cst = arith.constant dense<0.000000e+00> : vector<32x16xf32>
    %2 = tpu.matmul %0, %1, %cst {dimension_numbers = #tpu.dot_dimension_numbers<[1], [0], [0], [1], [0, 0, 1, 1], [], []>} : vector<32x16xf32>, vector<16x16xf32>, vector<32x16xf32> -> vector<32x16xf32>
    %c0_3 = arith.constant 0 : index
    %c0_4 = arith.constant 0 : index
    %3 = vector.load %arg3[%c0_3, %c0_4] : memref<32x1xf32, #tpu.memory_space<vmem>>, vector<32x1xf32>
    %4 = vector.broadcast %3 : vector<32x1xf32> to vector<32x16xf32>
    %5 = arith.addf %2, %4 : vector<32x16xf32>
    %6 = math.tanh %5 : vector<32x16xf32>
    %c0_5 = arith.constant 0 : index
    %c0_6 = arith.constant 0 : index
    %7 = vector.load %arg4[%c0_5, %c0_6] : memref<24x32xf32, #tpu.memory_space<vmem>>, vector<24x32xf32>
    %cst_7 = arith.constant dense<0.000000e+00> : vector<24x16xf32>
    %8 = tpu.matmul %7, %6, %cst_7 {dimension_numbers = #tpu.dot_dimension_numbers<[1], [0], [0], [1], [0, 0, 1, 1], [], []>} : vector<24x32xf32>, vector<32x16xf32>, vector<24x16xf32> -> vector<24x16xf32>
    %c0_8 = arith.constant 0 : index
    %c0_9 = arith.constant 0 : index
    %9 = vector.load %arg5[%c0_8, %c0_9] : memref<24x1xf32, #tpu.memory_space<vmem>>, vector<24x1xf32>
    %10 = vector.broadcast %9 : vector<24x1xf32> to vector<24x16xf32>
    %11 = arith.addf %8, %10 : vector<24x16xf32>
    %c0_10 = arith.constant 0 : index
    %c0_11 = arith.constant 0 : index
    %12 = vector.load %arg6[%c0_10, %c0_11] : memref<24x16xf32, #tpu.memory_space<vmem>>, vector<24x16xf32>
    tpu.vector_store %arg6[%c0_10, %c0_11], %11 {strides = array<i32>} : memref<24x16xf32, #tpu.memory_space<vmem>>, vector<24x16xf32>,
    return
  }
  func.func @transform_0(%arg0: i32) -> (i32, i32) {
    %c0_i32 = arith.constant 0 : i32
    %c0_i32_0 = arith.constant 0 : i32
    return %c0_i32, %arg0 : i32, i32
  }
  func.func @transform_1(%arg0: i32) -> (i32, i32) {
    %c0_i32 = arith.constant 0 : i32
    %c0_i32_0 = arith.constant 0 : i32
    %c0_i32_1 = arith.constant 0 : i32
    return %c0_i32, %c0_i32_0 : i32, i32
  }
  func.func @transform_2(%arg0: i32) -> (i32, i32) {
    %c0_i32 = arith.constant 0 : i32
    %c0_i32_0 = arith.constant 0 : i32
    %c0_i32_1 = arith.constant 0 : i32
    return %c0_i32, %c0_i32_0 : i32, i32
  }
  func.func @transform_3(%arg0: i32) -> (i32, i32) {
    %c0_i32 = arith.constant 0 : i32
    %c0_i32_0 = arith.constant 0 : i32
    %c0_i32_1 = arith.constant 0 : i32
    return %c0_i32, %c0_i32_0 : i32, i32
  }
  func.func @transform_4(%arg0: i32) -> (i32, i32) {
    %c0_i32 = arith.constant 0 : i32
    %c0_i32_0 = arith.constant 0 : i32
    %c0_i32_1 = arith.constant 0 : i32
    return %c0_i32, %c0_i32_0 : i32, i32
  }
  func.func @transform_5(%arg0: i32) -> (i32, i32) {
    %c0_i32 = arith.constant 0 : i32
    %c0_i32_0 = arith.constant 0 : i32
    return %c0_i32, %arg0 : i32, i32
  }
}

</mosaic_0001>

<bundles_post_ra>
// kernel: tpu_custom_call.1
= control target key start
LH: loop header
LB: loop body
LE: loop exit
PB: predicated region body
PF: predicated region fallthrough
CT: control target
= control target key end

     0   :  { %v185_v2 = vmov 0   ;;  %vm50_vm0 = vcmask 130048   ;;  %vm117_vm1 = vcmask 261120   ;;  %s280_s0 = inlined_call_operand.vmem [shape: f32[16,16], index: 0, kind: input, shape index: {}]   ;;  %s281_s1 = inlined_call_operand.vmem [shape: f32[32,16], index: 1, kind: input, shape index: {}]   ;;  %s282_s2 = inlined_call_operand.vmem [shape: f32[32,1], index: 2, kind: input, shape index: {}]   ;;  %s283_s4 = inlined_call_operand.vmem [shape: f32[24,1], index: 4, kind: input, shape index: {}]   ;;  %s284_s3 = inlined_call_operand.vmem [shape: f32[24,32], index: 3, kind: input, shape index: {}]   ;;  %s285_s5 = inlined_call_operand.vmem [shape: f32[24,16], index: 5, kind: output, shape index: {}]  }
   0x1   :  { %v25_v0 = vld [vmem:[%s280_s0 + $0x8] sm:$0xff]  ;;  %v24_v1 = vld [vmem:[%s280_s0] sm:$0xff]  ;;  %174 = vset.pattern.permute.xlu0 %v185_v2  ;;  %175 = vset.pattern.permute.xlu1 %v185_v2  ;;  %v22_v3 = vld [vmem:[%s281_s1 + $0x10] sm:$0xff] }
   0x2   :  { %167 = vmatpush.msra.mxu2 %v25_v0  ;;  %77 = vmatpush.msra.mxu0 %v25_v0  ;;  %v29_v4 = vld [vmem:[%s282_s2 + $0x18] sm:$0xff]  ;;  %v20_v5 = vld [vmem:[%s281_s1] sm:$0xff]  ;;  %v27_v6 = vld [vmem:[%s282_s2 + $0x8] sm:$0xff] }
   0x3   :  { %47 = vperm.xlu0 %174, %v29_v4   ;;  %176 = vset.pattern.permute.xlu2 %v185_v2  ;;  %v28_v7 = vld [vmem:[%s282_s2 + $0x10] sm:$0xff]  ;;  %v23_v8 = vld [vmem:[%s281_s1 + $0x18] sm:$0xff]  ;;  %v21_v9 = vld [vmem:[%s281_s1 + $0x8] sm:$0xff] }
   0x4   :  { %168 = vmatpush.msra.mxu2 %v24_v1  ;;  %78 = vmatpush.msra.mxu0 %v24_v1  ;;  %v26_v10 = vld [vmem:[%s282_s2] sm:$0xff]  ;;  %v101_v11 = vld [vmem:[%s283_s4 + $0x10] sm:$0xff]  ;;  %v100_v18 = vld [vmem:[%s283_s4 + $0x8] sm:$0xff] }
   0x5   :  { %162 = vmatmul.msk.f32.vlgmr.msra.gmra.mxu2 %vm50_vm0, %v22_v3  ;;  %160 = vmatmul.msk.f32.vlgmr.msra.gmra.mxu0 %vm50_vm0, %v20_v5  ;;  %v99_v16 = vld [vmem:[%s283_s4] sm:$0xff]  ;;  %v97_v29 = vld [vmem:[%s284_s3 + $0x8] sm:$0xff]  ;;  %v98_v32 = vld [vmem:[%s284_s3 + $0x10] sm:$0xff] }
   0x6   :  { %37 = vperm.xlu1 %175, %v27_v6   ;;  %104 = vperm.xlu2 %176, %v99_v16   ;;  %v96_v30 = vld [vmem:[%s284_s3] sm:$0xff] }
   0xb   :  { %42 = vperm.xlu0 %174, %v28_v7  }
   0xd   :  { %163 = vmatmul.msk.f32.gmra.mxu2 %vm50_vm0, %v23_v8  ;;  %161 = vmatmul.msk.f32.gmra.mxu0 %vm50_vm0, %v21_v9 }
   0xe   :  { %32 = vperm.xlu1 %175, %v26_v10   ;;  %109 = vperm.xlu2 %176, %v100_v18  }
  0x13   :  { %114 = vperm.xlu0 %174, %v101_v11  }
  0x60   :  { %v105_v33 = vpop.permute.xlu2 %104 }
  0x68   :  { %v110_v36 = vpop.permute.xlu2 %109 }
  0x75   :  { %v48_v12 = vpop.permute.xlu0 %47 }
  0x78   :  { %v38_v14 = vpop.permute.xlu1 %37 }
  0x7d   :  { %v43_v17 = vpop.permute.xlu0 %42 }
  0x80   :  { %v33_v23 = vpop.permute.xlu1 %32 }
  0x82   :  { %v80_v13 = vpop.f32.mrf.mxu0 }
  0x83   :  { %v81_v25 = vadd.f32 %v80_v13, %v33_v23 }
  0x85   :  { %v115_v39 = vpop.permute.xlu0 %114 }
  0x88   :  { %v86_v15 = vpop.f32.mrf.mxu2 }
  0x89   :  { %v87_v21 = vadd.f32 %v86_v15, %v43_v17 }
  0x8a   :  { %v83_v19 = vpop.f32.mrf.mxu0 }
  0x8b   :  { %v84_v24 = vadd.f32 %v83_v19, %v38_v14 }
  0x90   :  { %v89_v20 = vpop.f32.mrf.mxu2 }
  0x91   :  { %v90_v22 = vadd.f32 %v89_v20, %v48_v12 }
  0x93   :  { %177 = vtanh.f32 %v90_v22 }
  0x94   :  { %179 = vtanh.f32 %v87_v21 }
  0x95   :  { %181 = vtanh.f32 %v84_v24 }
  0x96   :  { %183 = vtanh.f32 %v81_v25 }
  0x99   :  { %v178_v26 = vpop.eup %177 }
  0x9a   :  { %139 = vmatpush.msra.mxu1 %v178_v26  ;;  %169 = vmatpush.msra.mxu3 %v178_v26  ;;  %v180_v27 = vpop.eup %179 }
  0x9b   :  { %v182_v28 = vpop.eup %181 }
  0x9c   :  { %140 = vmatpush.msra.mxu1 %v180_v27  ;;  %170 = vmatpush.msra.mxu3 %v180_v27  ;;  %v184_v31 = vpop.eup %183 }
  0x9e   :  { %141 = vmatpush.msra.mxu1 %v182_v28  ;;  %171 = vmatpush.msra.mxu3 %v182_v28 }
  0xa0   :  { %142 = vmatpush.msra.mxu1 %v184_v31  ;;  %172 = vmatpush.msra.mxu3 %v184_v31 }
  0xa1   :  { %165 = vmatmul.msk.f32.vlgmr.msra.gmra.mxu3 %vm117_vm1, %v97_v29  ;;  %164 = vmatmul.msk.f32.vlgmr.msra.gmra.mxu1 %vm117_vm1, %v96_v30 }
  0xa9   :  { %166 = vmatmul.msk.f32.gmra.mxu3 %vm117_vm1, %v98_v32 }
 0x11e   :  { %v144_v34 = vpop.f32.mrf.mxu1 }
 0x11f   :  { %v145_v35 = vadd.f32 %v144_v34, %v105_v33 }
 0x121   :  { %153 = vst.msk [vmem:[%s285_s5] sm:$0xff] %vm50_vm0, %v145_v35 }
 0x124   :  { %v147_v37 = vpop.f32.mrf.mxu3 }
 0x125   :  { %v148_v38 = vadd.f32 %v147_v37, %v110_v36 }
 0x127   :  { %154 = vst.msk [vmem:[%s285_s5 + $0x8] sm:$0xff] %vm50_vm0, %v148_v38 }
 0x12c   :  { %v150_v40 = vpop.f32.mrf.mxu3 }
 0x12d   :  { %v151_v41 = vadd.f32 %v150_v40, %v115_v39 }
 0x12f   :  { %155 = vst.msk [vmem:[%s285_s5 + $0x10] sm:$0xff] %vm50_vm0, %v151_v41 }

</bundles_post_ra>
